<compile_context>
chip_gen: v7x
topology: tpu7x:2x2x1
jax: 0.10.0
libtpu: 0.0.40
codegen_flags: <defaults>
</compile_context>

<pallas_src>
import jax
import jax.numpy as jnp
from jax import lax
from jax.experimental import pallas as pl
from jax.experimental.pallas import tpu as pltpu


def _full_spec(shape):
    # full-array block, single (implicit) grid point
    return pl.BlockSpec(shape, lambda: (0,) * len(shape))


# -----------------------------------------------------------------------------
# weight packing for the fused sequence kernel (done once, outside the kernels)
# -----------------------------------------------------------------------------
def pack_params(U, W, b, V, c):
    """Pack parameters for the batch-major, matmul-fused sequence kernel.

    Layout of the fused activation is [h | x], so the packed weight is
    [W U]^T of shape (H+I, H):  [h x] @ [W U]^T = h@W^T + x@U^T.
    """
    w_cat = jnp.concatenate([W, U], axis=1).T   # (H+I, H)
    b_row = b.T                                 # (1, H)
    v_t = V.T                                   # (H, O)
    c_row = c.T                                 # (1, O)
    return w_cat, b_row, v_t, c_row


# -----------------------------------------------------------------------------
# single-step kernel (matches CharRNN.forward exactly, module layout end-to-end)
# -----------------------------------------------------------------------------
def _char_rnn_step_kernel(u_ref, w_ref, b_ref, v_ref, c_ref, x_ref, hprev_ref,
                          logits_ref, h_ref):
    # column-major math, identical to the module: no wrapper transposes/concats
    pre = (jnp.dot(u_ref[...], x_ref[...], preferred_element_type=jnp.float32)
           + jnp.dot(w_ref[...], hprev_ref[...],
                     preferred_element_type=jnp.float32)
           + b_ref[...])                               # (H, B), b broadcasts (H,1)
    h = jnp.tanh(pre)
    h_ref[...] = h.astype(h_ref.dtype)
    logits_ref[...] = (jnp.dot(v_ref[...], h, preferred_element_type=jnp.float32)
                       + c_ref[...]).astype(logits_ref.dtype)


@jax.jit
def char_rnn_forward(U, W, b, V, c, x, h_prev):
    """One RNN step.  x:(I,B), h_prev:(H,B)  ->  (logits:(O,B), h:(H,B))."""
    H, I = U.shape
    O = V.shape[0]
    B = x.shape[1]
    return pl.pallas_call(
        _char_rnn_step_kernel,
        out_shape=(jax.ShapeDtypeStruct((O, B), x.dtype),
                   jax.ShapeDtypeStruct((H, B), x.dtype)),
        in_specs=[_full_spec(a.shape) for a in (U, W, b, V, c, x, h_prev)],
        out_specs=(_full_spec((O, B)), _full_spec((H, B))),
    )(U, W, b, V, c, x, h_prev)


# -----------------------------------------------------------------------------
# fused T-step recurrence: ONE pallas_call, no grid, everything VMEM-resident
# -----------------------------------------------------------------------------
def _char_rnn_seq_kernel(wcat_ref, b_ref, vt_ref, c_ref, h0_ref, x_ref,
                         logits_ref, h_last_ref, hx_scr):
    T, B, I = x_ref.shape
    H = h0_ref.shape[1]
    O = c_ref.shape[1]

    # weights / biases loaded & broadcast ONCE (hoisted out of the time loop)
    wcat = wcat_ref[...]                                  # (H+I, H)
    vt = vt_ref[...]                                      # (H, O)
    b_b = pl.broadcast_to(b_ref[...], (B, H))
    c_b = pl.broadcast_to(c_ref[...], (B, O))

    # fused activation scratch: [:, :H] carries h (lane offset 0, on the
    # recurrence critical path), [:, H:] holds x_t (off the critical path).
    hx_scr[:, :H] = h0_ref[...]

    def step(t, carry):
        hx_scr[:, H:] = x_ref[t]                          # place x_t
        pre = jnp.dot(hx_scr[...], wcat,
                      preferred_element_type=jnp.float32) + b_b   # one K=H+I push
        h = jnp.tanh(pre)
        hx_scr[:, :H] = h                                 # carry hidden state
        logits_ref[t] = (jnp.dot(h, vt, preferred_element_type=jnp.float32)
                         + c_b).astype(logits_ref.dtype)  # resident output block
        return carry

    lax.fori_loop(0, T, step, 0, unroll=True)             # T static -> fully unrolled

    # final hidden state stored exactly once
    h_last_ref[...] = hx_scr[:, :H].astype(h_last_ref.dtype)


@jax.jit
def char_rnn_sequence(w_cat, b_row, v_t, c_row, xs, h0):
    """Run the recurrence for all T steps in a single kernel invocation.

    Batch-major end-to-end: xs:(T, B, I), h0:(B, H).
    Returns (logits_seq:(T, B, O), h_T:(B, H)).
    """
    HI, H = w_cat.shape
    O = v_t.shape[1]
    T, B, I = xs.shape
    return pl.pallas_call(
        _char_rnn_seq_kernel,
        out_shape=(jax.ShapeDtypeStruct((T, B, O), xs.dtype),
                   jax.ShapeDtypeStruct((B, H), xs.dtype)),
        in_specs=[_full_spec(s) for s in
                  ((HI, H), (1, H), (H, O), (1, O), (B, H), (T, B, I))],
        out_specs=(_full_spec((T, B, O)), _full_spec((B, H))),
        scratch_shapes=[pltpu.VMEM((B, HI), jnp.float32)],   # [h | x] carry
    )(w_cat, b_row, v_t, c_row, h0, xs)


if __name__ == "__main__":
    input_size, hidden_size, output_size, batch, seq_len = 16, 32, 24, 2, 8

    key = jax.random.PRNGKey(0)
    k_u, k_w, k_v, k_x, k_h, k_xs = jax.random.split(key, 6)

    # deterministic parameter init matching the module's __init__ semantics
    U = jax.random.normal(k_u, (hidden_size, input_size), jnp.float32) * 0.01
    W = jax.random.normal(k_w, (hidden_size, hidden_size), jnp.float32) * 0.01
    b = jnp.zeros((hidden_size, 1), jnp.float32)
    V = jax.random.normal(k_v, (output_size, hidden_size), jnp.float32) * 0.01
    c = jnp.zeros((output_size, 1), jnp.float32)

    # inputs: single step in the module's column layout, sequence batch-major
    x = jax.random.normal(k_x, (input_size, batch), jnp.float32)
    h_prev = jax.random.normal(k_h, (hidden_size, batch), jnp.float32)
    xs_bm = jax.random.normal(k_xs, (seq_len, batch, input_size), jnp.float32)

    # ---- single step (the module's forward) --------------------------------
    logits, h = char_rnn_forward(U, W, b, V, c, x, h_prev)
    jax.block_until_ready((logits, h))

    h_ref = jnp.tanh(U @ x + W @ h_prev + b)
    logits_ref = V @ h_ref + c
    assert logits.shape == (output_size, batch) and h.shape == (hidden_size, batch)
    assert jnp.allclose(h, h_ref, atol=1e-5), "hidden state mismatch"
    assert jnp.allclose(logits, logits_ref, atol=1e-5), "logits mismatch"

    # ---- fused multi-step recurrence (single kernel invocation) ------------
    packed = pack_params(U, W, b, V, c)
    logits_seq, h_T = char_rnn_sequence(*packed, xs_bm, h_prev.T)
    jax.block_until_ready((logits_seq, h_T))

    h_r = h_prev
    for t in range(seq_len):
        x_t = xs_bm[t].T                                  # (I, B) module layout
        h_r = jnp.tanh(U @ x_t + W @ h_r + b)
        l_r = V @ h_r + c
        assert jnp.allclose(logits_seq[t], l_r.T, atol=1e-4), \
            f"seq logits mismatch @ t={t}"
    assert jnp.allclose(h_T, h_r.T, atol=1e-4), "final hidden mismatch"

    print("KERNEL_OK")
</pallas_src>

<mosaic_0001>
module attributes {stable_mosaic.version = 11 : i64} {
  func.func @_char_rnn_step_kernel(%arg0: memref<32x16xf32, #tpu.memory_space<vmem>>, %arg1: memref<32x32xf32, #tpu.memory_space<vmem>>, %arg2: memref<32x1xf32, #tpu.memory_space<vmem>>, %arg3: memref<24x32xf32, #tpu.memory_space<vmem>>, %arg4: memref<24x1xf32, #tpu.memory_space<vmem>>, %arg5: memref<16x2xf32, #tpu.memory_space<vmem>>, %arg6: memref<32x2xf32, #tpu.memory_space<vmem>>, %arg7: memref<24x2xf32, #tpu.memory_space<vmem>>, %arg8: memref<32x2xf32, #tpu.memory_space<vmem>>) attributes {dimension_semantics = [], scalar_prefetch = 0 : i64, scratch_operands = 0 : i64, tpu.core_type = #tpu.core_type<tc>} {
    %c0 = arith.constant 0 : index
    %c0_0 = arith.constant 0 : index
    %0 = vector.load %arg0[%c0, %c0_0] : memref<32x16xf32, #tpu.memory_space<vmem>>, vector<32x16xf32>
    %c0_1 = arith.constant 0 : index
    %c0_2 = arith.constant 0 : index
    %1 = vector.load %arg5[%c0_1, %c0_2] : memref<16x2xf32, #tpu.memory_space<vmem>>, vector<16x2xf32>
    %cst = arith.constant dense<0.000000e+00> : vector<32x2xf32>
    %2 = tpu.matmul %0, %1, %cst {dimension_numbers = #tpu.dot_dimension_numbers<[1], [0], [0], [1], [0, 0, 1, 1], [], []>} : vector<32x16xf32>, vector<16x2xf32>, vector<32x2xf32> -> vector<32x2xf32>
    %c0_3 = arith.constant 0 : index
    %c0_4 = arith.constant 0 : index
    %3 = vector.load %arg1[%c0_3, %c0_4] : memref<32x32xf32, #tpu.memory_space<vmem>>, vector<32x32xf32>
    %c0_5 = arith.constant 0 : index
    %c0_6 = arith.constant 0 : index
    %4 = vector.load %arg6[%c0_5, %c0_6] : memref<32x2xf32, #tpu.memory_space<vmem>>, vector<32x2xf32>
    %cst_7 = arith.constant dense<0.000000e+00> : vector<32x2xf32>
    %5 = tpu.matmul %3, %4, %cst_7 {dimension_numbers = #tpu.dot_dimension_numbers<[1], [0], [0], [1], [0, 0, 1, 1], [], []>} : vector<32x32xf32>, vector<32x2xf32>, vector<32x2xf32> -> vector<32x2xf32>
    %6 = arith.addf %2, %5 : vector<32x2xf32>
    %c0_8 = arith.constant 0 : index
    %c0_9 = arith.constant 0 : index
    %7 = vector.load %arg2[%c0_8, %c0_9] : memref<32x1xf32, #tpu.memory_space<vmem>>, vector<32x1xf32>
    %8 = vector.broadcast %7 : vector<32x1xf32> to vector<32x2xf32>
    %9 = arith.addf %6, %8 : vector<32x2xf32>
    %10 = math.tanh %9 : vector<32x2xf32>
    %c0_10 = arith.constant 0 : index
    %c0_11 = arith.constant 0 : index
    %11 = vector.load %arg8[%c0_10, %c0_11] : memref<32x2xf32, #tpu.memory_space<vmem>>, vector<32x2xf32>
    tpu.vector_store %arg8[%c0_10, %c0_11], %10 {strides = array<i32>} : memref<32x2xf32, #tpu.memory_space<vmem>>, vector<32x2xf32>,
    %c0_12 = arith.constant 0 : index
    %c0_13 = arith.constant 0 : index
    %12 = vector.load %arg3[%c0_12, %c0_13] : memref<24x32xf32, #tpu.memory_space<vmem>>, vector<24x32xf32>
    %cst_14 = arith.constant dense<0.000000e+00> : vector<24x2xf32>
    %13 = tpu.matmul %12, %10, %cst_14 {dimension_numbers = #tpu.dot_dimension_numbers<[1], [0], [0], [1], [0, 0, 1, 1], [], []>} : vector<24x32xf32>, vector<32x2xf32>, vector<24x2xf32> -> vector<24x2xf32>
    %c0_15 = arith.constant 0 : index
    %c0_16 = arith.constant 0 : index
    %14 = vector.load %arg4[%c0_15, %c0_16] : memref<24x1xf32, #tpu.memory_space<vmem>>, vector<24x1xf32>
    %15 = vector.broadcast %14 : vector<24x1xf32> to vector<24x2xf32>
    %16 = arith.addf %13, %15 : vector<24x2xf32>
    %c0_17 = arith.constant 0 : index
    %c0_18 = arith.constant 0 : index
    %17 = vector.load %arg7[%c0_17, %c0_18] : memref<24x2xf32, #tpu.memory_space<vmem>>, vector<24x2xf32>
    tpu.vector_store %arg7[%c0_17, %c0_18], %16 {strides = array<i32>} : memref<24x2xf32, #tpu.memory_space<vmem>>, vector<24x2xf32>,
    return
  }
}

</mosaic_0001>

<bundles_post_ra>
// kernel: char_rnn_forward.1
= control target key start
LH: loop header
LB: loop body
LE: loop exit
PB: predicated region body
PF: predicated region fallthrough
CT: control target
= control target key end

     0   :  { %vm42_vm0 = vcmask 261120   ;;  %v505_v3 = vmov 0   ;;  %vm140_vm1 = vcmask 130048   ;;  %v506_v25 = vmov 0.0|0.0   ;;  %s664_s6 = inlined_call_operand.vmem [shape: f32[32,2], index: 6, kind: input, shape index: {}]   ;;  %s665_s1 = inlined_call_operand.vmem [shape: f32[32,32], index: 1, kind: input, shape index: {}]   ;;  %s666_s5 = inlined_call_operand.vmem [shape: f32[16,2], index: 5, kind: input, shape index: {}]   ;;  %s667_s2 = inlined_call_operand.vmem [shape: f32[32,1], index: 2, kind: input, shape index: {}]   ;;  %s668_s4 = inlined_call_operand.vmem [shape: f32[24,1], index: 4, kind: input, shape index: {}]   ;;  %s669_s0 = inlined_call_operand.vmem [shape: f32[32,16], index: 0, kind: input, shape index: {}]   ;;  %s670_s8 = inlined_call_operand.vmem [shape: f32[32,2], index: 8, kind: output, shape index: {1}]   ;;  %s671_s3 = inlined_call_operand.vmem [shape: f32[24,32], index: 3, kind: input, shape index: {}]   ;;  %s672_s7 = inlined_call_operand.vmem [shape: f32[24,2], index: 7, kind: output, shape index: {0}]  }
   0x1   :  { %v38_v0 = vld [vmem:[%s664_s6] sm:$0xff]  ;;  %v39_v1 = vld [vmem:[%s664_s6 + $0x8] sm:$0xff]  ;;  %v40_v2 = vld [vmem:[%s664_s6 + $0x10] sm:$0xff]  ;;  %495 = vset.pattern.permute.xlu0 %v505_v3  ;;  %496 = vset.pattern.permute.xlu1 %v505_v3  ;;  %vm507_vm2 = vmmov 0   ;;  %v508_v26 = vmov 0.0   ;;  %vm270_vm3 = vcmask 15360  }
   0x2   :  { %v469_v4 = vpack.c.bf16 %v39_v1, %v38_v0  ;;  %v41_v5 = vld [vmem:[%s664_s6 + $0x18] sm:$0xff]  ;;  %v34_v6 = vld [vmem:[%s665_s1] sm:$0xff]  ;;  %v33_v9 = vld [vmem:[%s666_s5 + $0x8] sm:$0xff]  ;;  %481 = vmatprep.subr.bf16.mxu1 %v506_v25  ;;  %460 = vmatprep.mubr.msk.f32.mxu1 %vm507_vm2, %v508_v26 }
   0x3   :  { %v473_v7 = vpack.c.bf16 %v41_v5, %v40_v2  ;;  %436 = vmatprep.mubr.msk.f32.mxu0 %vm42_vm0, %v34_v6  ;;  %v32_v8 = vld [vmem:[%s666_s5] sm:$0xff]  ;;  %v240_v12 = vld [vmem:[%s667_s2 + $0x10] sm:$0xff]  ;;  %v239_v13 = vld [vmem:[%s667_s2 + $0x8] sm:$0xff] }
   0x4   :  { %470 = vmatprep.subr.bf16.mxu0 %v469_v4  ;;  %v238_v10 = vld [vmem:[%s667_s2] sm:$0xff]  ;;  %v477_v11 = vpack.c.bf16 %v33_v9, %v32_v8  ;;  %254 = vperm.xlu1 %496, %v240_v12   ;;  %v241_v14 = vld [vmem:[%s667_s2 + $0x18] sm:$0xff]  ;;  %v35_v15 = vld [vmem:[%s665_s1 + $0x8] sm:$0xff] }
   0x5   :  { %472 = vmatpush3.bf16.msra.mxu0 %v469_v4  ;;  %244 = vperm.xlu0 %495, %v238_v10   ;;  %v36_v16 = vld [vmem:[%s665_s1 + $0x10] sm:$0xff]  ;;  %v278_v17 = vld [vmem:[%s668_s4] sm:$0xff]  ;;  %v279_v18 = vld [vmem:[%s668_s4 + $0x8] sm:$0xff] }
   0x6   :  { %474 = vmatprep.subr.bf16.mxu0 %v473_v7  ;;  %v37_v19 = vld [vmem:[%s665_s1 + $0x18] sm:$0xff]  ;;  %v28_v20 = vld [vmem:[%s669_s0] sm:$0xff]  ;;  %v280_v21 = vld [vmem:[%s668_s4 + $0x10] sm:$0xff] }
   0x7   :  { %v29_v22 = vld [vmem:[%s669_s0 + $0x8] sm:$0xff]  ;;  %v30_v23 = vld [vmem:[%s669_s0 + $0x10] sm:$0xff]  ;;  %v31_v24 = vld [vmem:[%s669_s0 + $0x18] sm:$0xff] }
   0x8   :  { %259 = vperm.xlu1 %496, %v241_v14   ;;  %v275_v45 = vld [vmem:[%s671_s3] sm:$0xff]  ;;  %v276_v46 = vld [vmem:[%s671_s3 + $0x8] sm:$0xff]  ;;  %v277_v47 = vld [vmem:[%s671_s3 + $0x10] sm:$0xff] }
   0x9   :  { %476 = vmatpush3.bf16.msra.mxu0 %v473_v7  ;;  %249 = vperm.xlu0 %495, %v239_v13  }
   0xa   :  { %478 = vmatprep.subr.bf16.mxu0 %v477_v11 }
   0xc   :  { %437 = vmatmul.mubr.msk.f32.vlgmr.msra.gmra.mrb[0].mxu0 %vm42_vm0, %v35_v15  ;;  %288 = vperm.xlu1 %496, %v279_v18  }
   0xd   :  { %480 = vmatpush3.bf16.msra.mxu0 %v477_v11  ;;  %439 = vmatprep.mubr.msk.f32.mxu0 %vm42_vm0, %v36_v16 }
   0xe   :  { %283 = vperm.xlu0 %495, %v278_v17  }
  0x10   :  { %440 = vmatmul.mubr.msk.f32.gmra.mrb[2].mxu0 %vm42_vm0, %v37_v19 }
  0x11   :  { %446 = vmatprep.mubr.msk.f32.mxu0 %vm140_vm1, %v28_v20 }
  0x12   :  { %293 = vperm.xlu0 %495, %v280_v21  }
  0x14   :  { %447 = vmatmul.mubr.msk.f32.vlgmr.msra.gmra.mrb[0].mxu0 %vm140_vm1, %v29_v22 }
  0x15   :  { %449 = vmatprep.mubr.msk.f32.mxu0 %vm140_vm1, %v30_v23 }
  0x18   :  { %450 = vmatmul.mubr.msk.f32.gmra.mrb[2].mxu0 %vm140_vm1, %v31_v24 }
  0x83   :  { %v255_v28 = vpop.permute.xlu1 %254 }
  0x84   :  { %v245_v27 = vpop.permute.xlu0 %244 }
  0x87   :  { %v260_v34 = vpop.permute.xlu1 %259 }
  0x88   :  { %v250_v29 = vpop.permute.xlu0 %249 }
  0x8b   :  { %v289_v52 = vpop.permute.xlu1 %288 }
  0x8d   :  { %v284_v48 = vpop.permute.xlu0 %283 }
  0x91   :  { %v294_v56 = vpop.permute.xlu0 %293 }
  0xe7   :  { %v448_v30 = vpop.f32.mrb[0].mxu0 }
  0xe8   :  { %v263_v31 = vadd.f32 %v448_v30, %v250_v29  ;;  %v219_v32 = vpop.f32.mrb[1].mxu0 }
  0xe9   :  { %v262_v33 = vadd.f32 %v245_v27, %v219_v32 }
  0xea   :  { %497 = vtanh.f32 %v263_v31 }
  0xeb   :  { %499 = vtanh.f32 %v262_v33  ;;  %v451_v35 = vpop.f32.mrb[2].mxu0 }
  0xec   :  { %v265_v36 = vadd.f32 %v451_v35, %v260_v34  ;;  %v229_v37 = vpop.f32.mrb[3].mxu0 }
  0xed   :  { %v264_v38 = vadd.f32 %v255_v28, %v229_v37 }
  0xee   :  { %501 = vtanh.f32 %v265_v36 }
  0xef   :  { %503 = vtanh.f32 %v264_v38 }
  0xf4   :  { %v498_v39 = vpop.eup %497 }
  0xf5   :  { %v500_v40 = vpop.eup %499  ;;  %272 = vst.msk [vmem:[%s670_s8 + $0x8] sm:$0xff] %vm270_vm3, %v498_v39 }
  0xf6   :  { %v482_v41 = vpack.c.bf16 %v498_v39, %v500_v40  ;;  %271 = vst.msk [vmem:[%s670_s8] sm:$0xff] %vm270_vm3, %v500_v40 }
  0xf8   :  { %v502_v42 = vpop.eup %501  ;;  %483 = vmatpush3.bf16.msra.mxu1 %v482_v41 }
  0xf9   :  { %v504_v43 = vpop.eup %503  ;;  %484 = vmatprep.subr.bf16.mxu1 %v506_v25  ;;  %274 = vst.msk [vmem:[%s670_s8 + $0x18] sm:$0xff] %vm270_vm3, %v502_v42 }
  0xfa   :  { %v485_v44 = vpack.c.bf16 %v502_v42, %v504_v43  ;;  %273 = vst.msk [vmem:[%s670_s8 + $0x10] sm:$0xff] %vm270_vm3, %v504_v43 }
  0xfc   :  { %486 = vmatpush3.bf16.msra.mxu1 %v485_v44 }
  0xff   :  { %461 = vmatmul.mubr.msk.f32.vlgmr.msra.gmra.mrb[0].mxu1 %vm42_vm0, %v275_v45 }
 0x100   :  { %463 = vmatprep.mubr.msk.f32.mxu1 %vm507_vm2, %v508_v26 }
 0x103   :  { %464 = vmatmul.mubr.msk.f32.gmra.mrb[2].mxu1 %vm42_vm0, %v276_v46 }
 0x104   :  { %466 = vmatprep.mubr.msk.f32.mxu1 %vm507_vm2, %v508_v26 }
 0x107   :  { %467 = vmatmul.mubr.msk.f32.gmra.mrb[4].mxu1 %vm42_vm0, %v277_v47 }
 0x1d2   :  { %v371_v49 = vpop.f32.mrb[0].mxu1 }
 0x1d3   :  { %v372_v50 = vadd.f32 %v371_v49, %v284_v48  ;;  %v462_v51 = vpop.f32.mrb[1].mxu1 }
 0x1d5   :  { %385 = vst.msk [vmem:[%s672_s7] sm:$0xff] %vm270_vm3, %v372_v50 }
 0x1d6   :  { %v376_v53 = vpop.f32.mrb[2].mxu1 }
 0x1d7   :  { %v377_v54 = vadd.f32 %v376_v53, %v289_v52  ;;  %v465_v55 = vpop.f32.mrb[3].mxu1 }
 0x1d9   :  { %386 = vst.msk [vmem:[%s672_s7 + $0x8] sm:$0xff] %vm270_vm3, %v377_v54 }
 0x1da   :  { %v381_v57 = vpop.f32.mrb[4].mxu1 }
 0x1db   :  { %v382_v58 = vadd.f32 %v381_v57, %v294_v56  ;;  %v468_v59 = vpop.f32.mrb[5].mxu1 }
 0x1dd   :  { %387 = vst.msk [vmem:[%s672_s7 + $0x10] sm:$0xff] %vm270_vm3, %v382_v58 }

</bundles_post_ra>
